<compile_context>
chip_gen: v6e
topology: v6e:2x2x1
jax: 0.10.0
libtpu: 0.0.40
codegen_flags: <defaults>
</compile_context>

<pallas_src>
import functools

import jax
import jax.numpy as jnp
from jax.experimental import pallas as pl
from jax.experimental.pallas import tpu as pltpu


def _dwconv_kernel(x_ref, wdw_ref, b1_ref, wpw_ref, b2_ref, o_ref, *, K):
    """One (batch, H-tile) output block per grid step.

    x_ref  : (1, H, W, C)        full un-padded image (resident across H tiles)
    wdw_ref: (K*K, C)            depthwise weights, tap-major, BN1 scale folded in
    b1_ref : (1, C)              BN1 bias (beta - mean*scale)
    wpw_ref: (C, Cout)           pointwise weights, BN2 scale folded in
    b2_ref : (1, Cout)           BN2 bias
    o_ref  : (1, TH, W, Cout)
    """
    p = K // 2
    H, W, C = x_ref.shape[1], x_ref.shape[2], x_ref.shape[3]
    TH, Cout = o_ref.shape[1], o_ref.shape[3]
    cdt = wdw_ref.dtype          # compute dtype (bf16 on bf16 inputs, else f32)

    hi = pl.program_id(1)
    h0 = hi * TH
    if TH % 8 == 0:
        h0 = pl.multiple_of(h0, 8)   # aligned sublane start for the center slice

    # ---- build the (TH + 2p, W, C) input row band with a zero H-halo ----
    center = x_ref[0, pl.ds(h0, TH), :, :].astype(cdt)
    if p > 0:
        top = x_ref[0, pl.ds(jnp.maximum(hi * TH - p, 0), p), :, :].astype(cdt)
        top = top * (hi > 0).astype(cdt)                         # zero-pad above row 0
        bot = x_ref[0, pl.ds(jnp.minimum(hi * TH + TH, H - p), p), :, :].astype(cdt)
        bot = bot * (hi < pl.num_programs(1) - 1).astype(cdt)    # zero-pad below row H-1
        band = jnp.concatenate([top, center, bot], axis=0)       # (TH + 2p, W, C)
    else:
        band = center

    # ---- depthwise KxK conv (BN1 scale already folded into wdw) ----
    # Regroup taps by dx: accumulate the K dy-taps on the un-shifted band
    # (VPU), then one pltpu.roll along W (XLU, separate issue slot) plus a
    # single-sided column mask per dx for the zero W-halo.
    if K > 1:
        col = jax.lax.broadcasted_iota(jnp.int32, (TH, W, C), dimension=1)
    acc = None
    for dx in range(K):
        woff = dx - p
        part = None
        for dy in range(K):
            w_tap = wdw_ref[dy * K + dx, :]                      # (C,)
            term = band[dy:dy + TH] * w_tap
            part = term if part is None else part + term
        if woff != 0:
            # part[:, w] <- part[:, w + woff]  (wrapped columns masked to 0)
            part = pltpu.roll(part, shift=(-woff) % W, axis=1)
            if woff > 0:
                part = jnp.where(col < W - woff, part, jnp.zeros_like(part))
            else:
                part = jnp.where(col >= -woff, part, jnp.zeros_like(part))
        acc = part if acc is None else acc + part

    # ---- BN1 bias + ReLU ----
    y1 = jnp.maximum(acc + b1_ref[0, :], 0.0)                    # (TH, W, C)

    # ---- pointwise 1x1 conv (BN2 scale folded into wpw), f32 accumulate ----
    y2 = jnp.dot(y1.reshape(TH * W, C), wpw_ref[...],
                 preferred_element_type=jnp.float32)             # (TH*W, Cout)

    # ---- BN2 bias + ReLU ----
    y2 = jnp.maximum(y2 + b2_ref[0, :].astype(jnp.float32), 0.0)
    o_ref[...] = y2.reshape(1, TH, W, Cout).astype(o_ref.dtype)


def dwconv_pallas(x_nchw, w_dw, w_pw, bn1, bn2, *, kernel_size, block_h=None,
                  eps=1e-5):
    """DWConv forward pass.

    x_nchw : (N, C, H, W)     input, PyTorch layout
    w_dw   : (C, 1, K, K)     depthwise conv weight (PyTorch layout)
    w_pw   : (Cout, C, 1, 1)  pointwise conv weight (PyTorch layout)
    bn1    : dict(gamma, beta, mean, var) each (C,)
    bn2    : dict(gamma, beta, mean, var) each (Cout,)
    returns: (N, Cout, H, W)
    """
    K = kernel_size
    p = K // 2
    N, C, H, W = x_nchw.shape
    Cout = w_pw.shape[0]

    # NCHW -> NHWC (channels on the lane axis).
    x = jnp.transpose(x_nchw, (0, 2, 3, 1))

    # Compute dtype: bf16 stays bf16 (native on v6e/v7x); else f32 (v5e safe).
    cdt = jnp.bfloat16 if x.dtype == jnp.bfloat16 else jnp.float32

    # Fold eval-mode BN scales into the conv weights (bias stays separate and
    # is added before ReLU inside the kernel).
    s1 = bn1["gamma"] / jnp.sqrt(bn1["var"] + eps)
    b1 = bn1["beta"] - bn1["mean"] * s1
    s2 = bn2["gamma"] / jnp.sqrt(bn2["var"] + eps)
    b2 = bn2["beta"] - bn2["mean"] * s2

    wdw = jnp.transpose(w_dw[:, 0, :, :], (1, 2, 0)).reshape(K * K, C)  # (K*K, C)
    wdw = (wdw * s1[None, :]).astype(cdt)
    wpw = jnp.transpose(w_pw[:, :, 0, 0], (1, 0))                       # (C, Cout)
    wpw = (wpw * s2[None, :]).astype(cdt)
    b1 = b1.reshape(1, C).astype(cdt)
    b2 = b2.reshape(1, Cout).astype(jnp.float32)

    # H tile size: largest candidate dividing H (bounded intermediates, more
    # parallel grid points); halo rows are reconstructed in-kernel.
    if block_h is None or H % block_h != 0 or block_h < p:
        block_h = H
        for cand in (128, 64, 32, 16):
            if H % cand == 0 and cand >= p:
                block_h = cand
                break
    TH = block_h

    itemsize = jnp.dtype(x.dtype).itemsize
    flops = int(2 * N * H * W * C * K * K + 2 * N * H * W * C * Cout)
    bytes_accessed = int(
        N * H * W * (C + Cout) * itemsize
        + (K * K * C + C * Cout + C) * jnp.dtype(cdt).itemsize
        + Cout * 4)
    in_block = H * W * C * itemsize
    out_block = TH * W * Cout * itemsize
    vmem_limit = int(min(64 * 1024 * 1024,                       # v7x physical cap
                         max(16 * 1024 * 1024, 8 * (in_block + out_block))))

    kernel = functools.partial(_dwconv_kernel, K=K)

    out_nhwc = pl.pallas_call(
        kernel,
        out_shape=jax.ShapeDtypeStruct((N, H, W, Cout), x.dtype),
        grid_spec=pltpu.PrefetchScalarGridSpec(
            num_scalar_prefetch=0,
            grid=(N, H // TH),
            in_specs=[
                # Constant block index along the H axis -> the image is DMA'd
                # once per batch element and stays resident across its tiles.
                pl.BlockSpec((1, H, W, C), lambda n, h: (n, 0, 0, 0)),
                pl.BlockSpec((K * K, C), lambda n, h: (0, 0)),
                pl.BlockSpec((1, C), lambda n, h: (0, 0)),
                pl.BlockSpec((C, Cout), lambda n, h: (0, 0)),
                pl.BlockSpec((1, Cout), lambda n, h: (0, 0)),
            ],
            out_specs=pl.BlockSpec((1, TH, W, Cout), lambda n, h: (n, h, 0, 0)),
        ),
        compiler_params=pltpu.CompilerParams(
            dimension_semantics=("parallel", "parallel"),
            vmem_limit_bytes=vmem_limit),
        cost_estimate=pl.CostEstimate(
            flops=flops, transcendentals=0, bytes_accessed=bytes_accessed),
    )(x, wdw, b1, wpw, b2)

    # NHWC -> NCHW
    return jnp.transpose(out_nhwc, (0, 3, 1, 2))


def dwconv_reference(x_nchw, w_dw, w_pw, bn1, bn2, *, kernel_size):
    """Pure-JAX reference using lax.conv_general_dilated (eval-mode BN)."""
    K = kernel_size
    p = K // 2
    C = x_nchw.shape[1]
    eps = 1e-5

    y = jax.lax.conv_general_dilated(
        x_nchw.astype(jnp.float32), w_dw.astype(jnp.float32),
        window_strides=(1, 1), padding=((p, p), (p, p)),
        dimension_numbers=("NCHW", "OIHW", "NCHW"),
        feature_group_count=C)
    s1 = bn1["gamma"] / jnp.sqrt(bn1["var"] + eps)
    y = y * s1[None, :, None, None] + (bn1["beta"] - bn1["mean"] * s1)[None, :, None, None]
    y = jnp.maximum(y, 0.0)

    y = jax.lax.conv_general_dilated(
        y, w_pw.astype(jnp.float32),
        window_strides=(1, 1), padding="VALID",
        dimension_numbers=("NCHW", "OIHW", "NCHW"))
    s2 = bn2["gamma"] / jnp.sqrt(bn2["var"] + eps)
    y = y * s2[None, :, None, None] + (bn2["beta"] - bn2["mean"] * s2)[None, :, None, None]
    return jnp.maximum(y, 0.0)


if __name__ == "__main__":
    # Small deterministic config: DWConv(in_channels=4, out_channels=8, kernel_size=3)
    N, C_in, C_out, H, W, K = 2, 4, 8, 16, 16, 3

    key = jax.random.PRNGKey(0)
    k1, k2, k3, k4, k5, k6, k7, k8, k9 = jax.random.split(key, 9)

    x = jax.random.normal(k1, (N, C_in, H, W), jnp.float32)
    w_dw = jax.random.normal(k2, (C_in, 1, K, K), jnp.float32) * 0.3
    w_pw = jax.random.normal(k3, (C_out, C_in, 1, 1), jnp.float32) * 0.3
    bn1 = dict(
        gamma=1.0 + 0.1 * jax.random.normal(k4, (C_in,), jnp.float32),
        beta=0.1 * jax.random.normal(k5, (C_in,), jnp.float32),
        mean=0.05 * jax.random.normal(k6, (C_in,), jnp.float32),
        var=jnp.abs(1.0 + 0.1 * jax.random.normal(k7, (C_in,), jnp.float32)),
    )
    bn2 = dict(
        gamma=1.0 + 0.1 * jax.random.normal(k8, (C_out,), jnp.float32),
        beta=0.1 * jax.random.normal(k9, (C_out,), jnp.float32),
        mean=jnp.zeros((C_out,), jnp.float32),
        var=jnp.ones((C_out,), jnp.float32),
    )

    # block_h=8 -> grid (N, 2) so both edge and interior H-tile halo paths run.
    out = dwconv_pallas(x, w_dw, w_pw, bn1, bn2, kernel_size=K, block_h=8)
    out = jax.block_until_ready(out)

    ref = dwconv_reference(x, w_dw, w_pw, bn1, bn2, kernel_size=K)
    assert out.shape == (N, C_out, H, W), out.shape
    assert jnp.allclose(out, ref, atol=1e-4, rtol=1e-4), float(
        jnp.max(jnp.abs(out - ref)))

    print("KERNEL_OK")
</pallas_src>

<mosaic_0001>
module attributes {stable_mosaic.version = 11 : i64} {
  func.func @_dwconv_kernel(%arg0: i32, %arg1: i32, %arg2: memref<1x16x16x4xf32, #tpu.memory_space<vmem>>, %arg3: memref<9x4xf32, #tpu.memory_space<vmem>>, %arg4: memref<1x4xf32, #tpu.memory_space<vmem>>, %arg5: memref<4x8xf32, #tpu.memory_space<vmem>>, %arg6: memref<1x8xf32, #tpu.memory_space<vmem>>, %arg7: memref<1x8x16x8xf32, #tpu.memory_space<vmem>>) attributes {dimension_semantics = [#tpu.dimension_semantics<parallel>, #tpu.dimension_semantics<parallel>], iteration_bounds = array<i64: 2, 2>, scalar_prefetch = 0 : i64, scratch_operands = 0 : i64, tpu.core_type = #tpu.core_type<tc>, window_params = [{transform_indices = @transform_0, window_bounds = array<i64: 1, 16, 16, 4>}, {pipeline_mode = #tpu.pipeline_mode<synchronous>, transform_indices = @transform_1, window_bounds = array<i64: 9, 4>}, {pipeline_mode = #tpu.pipeline_mode<synchronous>, transform_indices = @transform_2, window_bounds = array<i64: 1, 4>}, {pipeline_mode = #tpu.pipeline_mode<synchronous>, transform_indices = @transform_3, window_bounds = array<i64: 4, 8>}, {pipeline_mode = #tpu.pipeline_mode<synchronous>, transform_indices = @transform_4, window_bounds = array<i64: 1, 8>}, {transform_indices = @transform_5, window_bounds = array<i64: 1, 8, 16, 8>}]} {
    %c8_i32 = arith.constant 8 : i32
    %0 = arith.muli %arg1, %c8_i32 : i32
    %1 = tpu.assume_multiple %0, 8 : i32
    %c0 = arith.constant 0 : index
    %2 = arith.index_cast %1 : i32 to index
    %c0_0 = arith.constant 0 : index
    %c0_1 = arith.constant 0 : index
    %3 = vector.load %arg2[%c0, %2, %c0_0, %c0_1] : memref<1x16x16x4xf32, #tpu.memory_space<vmem>>, vector<1x8x16x4xf32>
    %4 = vector.shape_cast %3 : vector<1x8x16x4xf32> to vector<8x16x4xf32>
    %c8_i32_2 = arith.constant 8 : i32
    %5 = arith.muli %arg1, %c8_i32_2 : i32
    %c1_i32 = arith.constant 1 : i32
    %6 = arith.subi %5, %c1_i32 : i32
    %c0_i32 = arith.constant 0 : i32
    %7 = arith.maxsi %6, %c0_i32 : i32
    %c0_3 = arith.constant 0 : index
    %8 = arith.index_cast %7 : i32 to index
    %c0_4 = arith.constant 0 : index
    %c0_5 = arith.constant 0 : index
    %9 = vector.load %arg2[%c0_3, %8, %c0_4, %c0_5] : memref<1x16x16x4xf32, #tpu.memory_space<vmem>>, vector<1x1x16x4xf32>
    %10 = vector.shape_cast %9 : vector<1x1x16x4xf32> to vector<1x16x4xf32>
    %c0_i32_6 = arith.constant 0 : i32
    %11 = arith.cmpi sgt, %arg1, %c0_i32_6 : i32
    %12 = arith.extui %11 : i1 to i32
    %13 = arith.sitofp %12 : i32 to f32
    %14 = vector.broadcast %13 : f32 to vector<1x16x4xf32>
    %15 = arith.mulf %10, %14 : vector<1x16x4xf32>
    %c8_i32_7 = arith.constant 8 : i32
    %16 = arith.muli %arg1, %c8_i32_7 : i32
    %c8_i32_8 = arith.constant 8 : i32
    %17 = arith.addi %16, %c8_i32_8 : i32
    %c15_i32 = arith.constant 15 : i32
    %18 = arith.minsi %17, %c15_i32 : i32
    %c0_9 = arith.constant 0 : index
    %19 = arith.index_cast %18 : i32 to index
    %c0_10 = arith.constant 0 : index
    %c0_11 = arith.constant 0 : index
    %20 = vector.load %arg2[%c0_9, %19, %c0_10, %c0_11] : memref<1x16x16x4xf32, #tpu.memory_space<vmem>>, vector<1x1x16x4xf32>
    %21 = vector.shape_cast %20 : vector<1x1x16x4xf32> to vector<1x16x4xf32>
    %c1_i32_12 = arith.constant 1 : i32
    %22 = arith.cmpi slt, %arg1, %c1_i32_12 : i32
    %23 = arith.extui %22 : i1 to i32
    %24 = arith.sitofp %23 : i32 to f32
    %25 = vector.broadcast %24 : f32 to vector<1x16x4xf32>
    %26 = arith.mulf %21, %25 : vector<1x16x4xf32>
    %27 = tpu.concatenate %15, %4, %26 in 0 : vector<1x16x4xf32>, vector<8x16x4xf32>, vector<1x16x4xf32> -> vector<10x16x4xf32>
    %28 = tpu.iota {dimensions = array<i32: 1>} : vector<8x16x4xi32>
    %c0_13 = arith.constant 0 : index
    %c0_14 = arith.constant 0 : index
    %29 = vector.load %arg3[%c0_13, %c0_14] : memref<9x4xf32, #tpu.memory_space<vmem>>, vector<1x4xf32>
    %30 = vector.shape_cast %29 : vector<1x4xf32> to vector<4xf32>
    %31 = vector.extract_strided_slice %27 {offsets = [0, 0, 0], sizes = [8, 16, 4], strides = [1, 1, 1]} : vector<10x16x4xf32> to vector<8x16x4xf32>
    %32 = vector.shape_cast %30 : vector<4xf32> to vector<1x1x4xf32>
    %33 = vector.broadcast %32 : vector<1x1x4xf32> to vector<8x16x4xf32>
    %34 = arith.mulf %31, %33 : vector<8x16x4xf32>
    %c3 = arith.constant 3 : index
    %c0_15 = arith.constant 0 : index
    %35 = vector.load %arg3[%c3, %c0_15] : memref<9x4xf32, #tpu.memory_space<vmem>>, vector<1x4xf32>
    %36 = vector.shape_cast %35 : vector<1x4xf32> to vector<4xf32>
    %37 = vector.extract_strided_slice %27 {offsets = [1, 0, 0], sizes = [8, 16, 4], strides = [1, 1, 1]} : vector<10x16x4xf32> to vector<8x16x4xf32>
    %38 = vector.shape_cast %36 : vector<4xf32> to vector<1x1x4xf32>
    %39 = vector.broadcast %38 : vector<1x1x4xf32> to vector<8x16x4xf32>
    %40 = arith.mulf %37, %39 : vector<8x16x4xf32>
    %41 = arith.addf %34, %40 : vector<8x16x4xf32>
    %c6 = arith.constant 6 : index
    %c0_16 = arith.constant 0 : index
    %42 = vector.load %arg3[%c6, %c0_16] : memref<9x4xf32, #tpu.memory_space<vmem>>, vector<1x4xf32>
    %43 = vector.shape_cast %42 : vector<1x4xf32> to vector<4xf32>
    %44 = vector.extract_strided_slice %27 {offsets = [2, 0, 0], sizes = [8, 16, 4], strides = [1, 1, 1]} : vector<10x16x4xf32> to vector<8x16x4xf32>
    %45 = vector.shape_cast %43 : vector<4xf32> to vector<1x1x4xf32>
    %46 = vector.broadcast %45 : vector<1x1x4xf32> to vector<8x16x4xf32>
    %47 = arith.mulf %44, %46 : vector<8x16x4xf32>
    %48 = arith.addf %41, %47 : vector<8x16x4xf32>
    %c1_i32_17 = arith.constant 1 : i32
    %49 = tpu.dynamic_rotate %48 by %c1_i32_17 dim 1 : vector<8x16x4xf32>, i32 -> vector<8x16x4xf32>
    %c1_i32_18 = arith.constant 1 : i32
    %50 = vector.broadcast %c1_i32_18 : i32 to vector<8x16x4xi32>
    %51 = arith.cmpi sge, %28, %50 : vector<8x16x4xi32>
    %cst = arith.constant 0.000000e+00 : f32
    %52 = vector.broadcast %cst : f32 to vector<8x16x4xf32>
    %53 = arith.select %51, %49, %52 : vector<8x16x4xi1>, vector<8x16x4xf32>
    %c1 = arith.constant 1 : index
    %c0_19 = arith.constant 0 : index
    %54 = vector.load %arg3[%c1, %c0_19] : memref<9x4xf32, #tpu.memory_space<vmem>>, vector<1x4xf32>
    %55 = vector.shape_cast %54 : vector<1x4xf32> to vector<4xf32>
    %56 = vector.extract_strided_slice %27 {offsets = [0, 0, 0], sizes = [8, 16, 4], strides = [1, 1, 1]} : vector<10x16x4xf32> to vector<8x16x4xf32>
    %57 = vector.shape_cast %55 : vector<4xf32> to vector<1x1x4xf32>
    %58 = vector.broadcast %57 : vector<1x1x4xf32> to vector<8x16x4xf32>
    %59 = arith.mulf %56, %58 : vector<8x16x4xf32>
    %c4 = arith.constant 4 : index
    %c0_20 = arith.constant 0 : index
    %60 = vector.load %arg3[%c4, %c0_20] : memref<9x4xf32, #tpu.memory_space<vmem>>, vector<1x4xf32>
    %61 = vector.shape_cast %60 : vector<1x4xf32> to vector<4xf32>
    %62 = vector.extract_strided_slice %27 {offsets = [1, 0, 0], sizes = [8, 16, 4], strides = [1, 1, 1]} : vector<10x16x4xf32> to vector<8x16x4xf32>
    %63 = vector.shape_cast %61 : vector<4xf32> to vector<1x1x4xf32>
    %64 = vector.broadcast %63 : vector<1x1x4xf32> to vector<8x16x4xf32>
    %65 = arith.mulf %62, %64 : vector<8x16x4xf32>
    %66 = arith.addf %59, %65 : vector<8x16x4xf32>
    %c7 = arith.constant 7 : index
    %c0_21 = arith.constant 0 : index
    %67 = vector.load %arg3[%c7, %c0_21] : memref<9x4xf32, #tpu.memory_space<vmem>>, vector<1x4xf32>
    %68 = vector.shape_cast %67 : vector<1x4xf32> to vector<4xf32>
    %69 = vector.extract_strided_slice %27 {offsets = [2, 0, 0], sizes = [8, 16, 4], strides = [1, 1, 1]} : vector<10x16x4xf32> to vector<8x16x4xf32>
    %70 = vector.shape_cast %68 : vector<4xf32> to vector<1x1x4xf32>
    %71 = vector.broadcast %70 : vector<1x1x4xf32> to vector<8x16x4xf32>
    %72 = arith.mulf %69, %71 : vector<8x16x4xf32>
    %73 = arith.addf %66, %72 : vector<8x16x4xf32>
    %74 = arith.addf %53, %73 : vector<8x16x4xf32>
    %c2 = arith.constant 2 : index
    %c0_22 = arith.constant 0 : index
    %75 = vector.load %arg3[%c2, %c0_22] : memref<9x4xf32, #tpu.memory_space<vmem>>, vector<1x4xf32>
    %76 = vector.shape_cast %75 : vector<1x4xf32> to vector<4xf32>
    %77 = vector.extract_strided_slice %27 {offsets = [0, 0, 0], sizes = [8, 16, 4], strides = [1, 1, 1]} : vector<10x16x4xf32> to vector<8x16x4xf32>
    %78 = vector.shape_cast %76 : vector<4xf32> to vector<1x1x4xf32>
    %79 = vector.broadcast %78 : vector<1x1x4xf32> to vector<8x16x4xf32>
    %80 = arith.mulf %77, %79 : vector<8x16x4xf32>
    %c5 = arith.constant 5 : index
    %c0_23 = arith.constant 0 : index
    %81 = vector.load %arg3[%c5, %c0_23] : memref<9x4xf32, #tpu.memory_space<vmem>>, vector<1x4xf32>
    %82 = vector.shape_cast %81 : vector<1x4xf32> to vector<4xf32>
    %83 = vector.extract_strided_slice %27 {offsets = [1, 0, 0], sizes = [8, 16, 4], strides = [1, 1, 1]} : vector<10x16x4xf32> to vector<8x16x4xf32>
    %84 = vector.shape_cast %82 : vector<4xf32> to vector<1x1x4xf32>
    %85 = vector.broadcast %84 : vector<1x1x4xf32> to vector<8x16x4xf32>
    %86 = arith.mulf %83, %85 : vector<8x16x4xf32>
    %87 = arith.addf %80, %86 : vector<8x16x4xf32>
    %c8 = arith.constant 8 : index
    %c0_24 = arith.constant 0 : index
    %88 = vector.load %arg3[%c8, %c0_24] : memref<9x4xf32, #tpu.memory_space<vmem>>, vector<1x4xf32>
    %89 = vector.shape_cast %88 : vector<1x4xf32> to vector<4xf32>
    %90 = vector.extract_strided_slice %27 {offsets = [2, 0, 0], sizes = [8, 16, 4], strides = [1, 1, 1]} : vector<10x16x4xf32> to vector<8x16x4xf32>
    %91 = vector.shape_cast %89 : vector<4xf32> to vector<1x1x4xf32>
    %92 = vector.broadcast %91 : vector<1x1x4xf32> to vector<8x16x4xf32>
    %93 = arith.mulf %90, %92 : vector<8x16x4xf32>
    %94 = arith.addf %87, %93 : vector<8x16x4xf32>
    %c15_i32_25 = arith.constant 15 : i32
    %95 = tpu.dynamic_rotate %94 by %c15_i32_25 dim 1 : vector<8x16x4xf32>, i32 -> vector<8x16x4xf32>
    %c15_i32_26 = arith.constant 15 : i32
    %96 = vector.broadcast %c15_i32_26 : i32 to vector<8x16x4xi32>
    %97 = arith.cmpi slt, %28, %96 : vector<8x16x4xi32>
    %cst_27 = arith.constant 0.000000e+00 : f32
    %98 = vector.broadcast %cst_27 : f32 to vector<8x16x4xf32>
    %99 = arith.select %97, %95, %98 : vector<8x16x4xi1>, vector<8x16x4xf32>
    %100 = arith.addf %74, %99 : vector<8x16x4xf32>
    %c0_28 = arith.constant 0 : index
    %c0_29 = arith.constant 0 : index
    %101 = vector.load %arg4[%c0_28, %c0_29] : memref<1x4xf32, #tpu.memory_space<vmem>>, vector<1x4xf32>
    %102 = vector.shape_cast %101 : vector<1x4xf32> to vector<4xf32>
    %103 = vector.shape_cast %102 : vector<4xf32> to vector<1x1x4xf32>
    %104 = vector.broadcast %103 : vector<1x1x4xf32> to vector<8x16x4xf32>
    %105 = arith.addf %100, %104 : vector<8x16x4xf32>
    %cst_30 = arith.constant 0.000000e+00 : f32
    %106 = vector.broadcast %cst_30 : f32 to vector<8x16x4xf32>
    %107 = arith.maximumf %105, %106 : vector<8x16x4xf32>
    %108 = vector.shape_cast %107 : vector<8x16x4xf32> to vector<128x4xf32>
    %c0_31 = arith.constant 0 : index
    %c0_32 = arith.constant 0 : index
    %109 = vector.load %arg5[%c0_31, %c0_32] : memref<4x8xf32, #tpu.memory_space<vmem>>, vector<4x8xf32>
    %cst_33 = arith.constant dense<0.000000e+00> : vector<128x8xf32>
    %110 = tpu.matmul %108, %109, %cst_33 {dimension_numbers = #tpu.dot_dimension_numbers<[1], [0], [0], [1], [0, 0, 1, 1], [], []>} : vector<128x4xf32>, vector<4x8xf32>, vector<128x8xf32> -> vector<128x8xf32>
    %c0_34 = arith.constant 0 : index
    %c0_35 = arith.constant 0 : index
    %111 = vector.load %arg6[%c0_34, %c0_35] : memref<1x8xf32, #tpu.memory_space<vmem>>, vector<1x8xf32>
    %112 = vector.shape_cast %111 : vector<1x8xf32> to vector<8xf32>
    %113 = vector.shape_cast %112 : vector<8xf32> to vector<1x8xf32>
    %114 = vector.broadcast %113 : vector<1x8xf32> to vector<128x8xf32>
    %115 = arith.addf %110, %114 : vector<128x8xf32>
    %cst_36 = arith.constant 0.000000e+00 : f32
    %116 = vector.broadcast %cst_36 : f32 to vector<128x8xf32>
    %117 = arith.maximumf %115, %116 : vector<128x8xf32>
    %118 = vector.shape_cast %117 : vector<128x8xf32> to vector<1x8x16x8xf32>
    %c0_37 = arith.constant 0 : index
    %c0_38 = arith.constant 0 : index
    %c0_39 = arith.constant 0 : index
    %c0_40 = arith.constant 0 : index
    %119 = vector.load %arg7[%c0_37, %c0_38, %c0_39, %c0_40] : memref<1x8x16x8xf32, #tpu.memory_space<vmem>>, vector<1x8x16x8xf32>
    tpu.vector_store %arg7[%c0_37, %c0_38, %c0_39, %c0_40], %118 {strides = array<i32>} : memref<1x8x16x8xf32, #tpu.memory_space<vmem>>, vector<1x8x16x8xf32>,
    return
  }
  func.func @transform_0(%arg0: i32, %arg1: i32) -> (i32, i32, i32, i32) {
    %c0_i32 = arith.constant 0 : i32
    %c0_i32_0 = arith.constant 0 : i32
    %c0_i32_1 = arith.constant 0 : i32
    %c0_i32_2 = arith.constant 0 : i32
    return %arg0, %c0_i32, %c0_i32_0, %c0_i32_1 : i32, i32, i32, i32
  }
  func.func @transform_1(%arg0: i32, %arg1: i32) -> (i32, i32) {
    %c0_i32 = arith.constant 0 : i32
    %c0_i32_0 = arith.constant 0 : i32
    %c0_i32_1 = arith.constant 0 : i32
    return %c0_i32, %c0_i32_0 : i32, i32
  }
  func.func @transform_2(%arg0: i32, %arg1: i32) -> (i32, i32) {
    %c0_i32 = arith.constant 0 : i32
    %c0_i32_0 = arith.constant 0 : i32
    %c0_i32_1 = arith.constant 0 : i32
    return %c0_i32, %c0_i32_0 : i32, i32
  }
  func.func @transform_3(%arg0: i32, %arg1: i32) -> (i32, i32) {
    %c0_i32 = arith.constant 0 : i32
    %c0_i32_0 = arith.constant 0 : i32
    %c0_i32_1 = arith.constant 0 : i32
    return %c0_i32, %c0_i32_0 : i32, i32
  }
  func.func @transform_4(%arg0: i32, %arg1: i32) -> (i32, i32) {
    %c0_i32 = arith.constant 0 : i32
    %c0_i32_0 = arith.constant 0 : i32
    %c0_i32_1 = arith.constant 0 : i32
    return %c0_i32, %c0_i32_0 : i32, i32
  }
  func.func @transform_5(%arg0: i32, %arg1: i32) -> (i32, i32, i32, i32) {
    %c0_i32 = arith.constant 0 : i32
    %c0_i32_0 = arith.constant 0 : i32
    %c0_i32_1 = arith.constant 0 : i32
    return %arg0, %arg1, %c0_i32, %c0_i32_0 : i32, i32, i32, i32
  }
}

</mosaic_0001>

<bundles_post_ra>
// kernel: tpu_custom_call.1
= control target key start
LH: loop header
LB: loop body
LE: loop exit
PB: predicated region body
PF: predicated region fallthrough
CT: control target
= control target key end

     0   :  { %s1294_s18 = smov 0   ;;  %s1296_s19 = smov 0   ;;  %s1972_s0 = inlined_call_operand.vmem [shape: f32[2,16,16,4], index: 0, kind: input, shape index: {}]   ;;  %s1973_s1 = inlined_call_operand.vmem [shape: f32[9,4], index: 1, kind: input, shape index: {}]   ;;  %s1974_s2 = inlined_call_operand.vmem [shape: f32[1,4], index: 2, kind: input, shape index: {}]   ;;  %s1975_s3 = inlined_call_operand.vmem [shape: f32[4,8], index: 3, kind: input, shape index: {}]   ;;  %s1976_s4 = inlined_call_operand.vmem [shape: f32[1,8], index: 4, kind: input, shape index: {}]   ;;  %s1977_s5 = inlined_call_operand.vmem [shape: f32[2,16,16,8], index: 5, kind: output, shape index: {}]  }
   0x1   :  { %s1298_s20 = smov 0   ;;  %s1300_s21 = smov 0  }
   0x2   :  { %s1302_s22 = smov 0  }
   0x3 LB: > { %s24_s23 = sadd.s32 1, %s1254_s20  ;;  %s27_s24 = sadd.s32 1, %s1258_s21  ;;  %s1262_s22 = sphi %s1302_s22, %s15_s22   ;;  %s1258_s21 = sphi %s1300_s21, %s1983_s21   ;;  %s1254_s20 = sphi %s1298_s20, %s1982_s20   ;;  %s1250_s19 = sphi %s1296_s19, %s1981_s19   ;;  %s1246_s18 = sphi %s1294_s18, %s1980_s18  }
   0x4   : > { %p25_p0 = scmp.ge.s32.totalorder %s24_s23, 2  ;;  %p1095_p1 = scmp.ge.s32.totalorder %s1262_s22, 1 }
   0x5   : > { %p201_p2 = scmp.lt.s32.totalorder %s1262_s22, 5 }
   0x6   : > { %s1985_s23 = smov (%p25_p0, %s24_s23), 0  ;;  %s1987_s24 = smov (!%p25_p0, %s27_s24), %s1258_s21 }
   0x7   : > { %p202_p3 = pnand %p1095_p1, %p201_p2  ;;  %p29_p4 = scmp.ge.s32.totalorder %s1987_s24, 2 }
   0x8   : > { %p234_p5 = scmp.lt.s32.totalorder (!%p202_p3), %s1250_s19, 1  ;;  %s1138_s27 = sshll.u32 (!%p202_p3), %s1246_s18, 7 }
   0x9   : > { %s1989_s24 = smov (%p29_p4, %s1987_s24), 0  ;;  %205 = sbr.rel (%p202_p3) target bundleno = 325 (0x145), region = 40 }
   0xa   : > { %s1374_s26 = sshll.u32 (!%p202_p3), %s1246_s18, 3  ;;  %p276_p8 = scmp.gt.s32.totalorder (!%p202_p3), %s1246_s18, 0 }
   0xb   : > { %p242_p6 = scmp.lt.s32.totalorder (!%p202_p3), %s1374_s26, 15  ;;  %s1104_s8 = sadd.s32 (!%p202_p3), 4294967295, %s1374_s26 }
   0xc   : > { %p1446_p7 = scmp.gt.s32.totalorder (!%p202_p3), %s1104_s8, 0  ;;  %p289_p10 = scmp.lt.s32.totalorder (!%p202_p3), %s1246_s18, 1 }
   0xe   : > { %v756_v0 = vld [vmem:[%s1975_s3] sm:$0xf]  ;;  %vm813_vm0 = vcmask 1043456   ;;  %v295_v1 = vlaneseq  ;;  %s1991_s19 = smov (!%p234_p5, %s1250_s19), 1  ;;  %v1348_v5 = vld [vmem:[%s1973_s1 + $0x6] ss:$0 sm:$0xff] }
   0xf   : > { %1182 = vmatprep.subr.msk.mxu1 %vm813_vm0, %v756_v0  ;;  %1156 = vmatprep.subr.msk.mxu0 %vm813_vm0, %v756_v0  ;;  %v1337_v3 = vld [vmem:[%s1973_s1] ss:$0 sm:$0xff]  ;;  %v1342_v4 = vld [vmem:[%s1973_s1 + $0x3] ss:$0 sm:$0xff]  ;;  %s1137_s7 = sshll.u32 %s1991_s19, 8  ;;  %s1993_s8 = smov (!%p1446_p7, %s1104_s8), 0 }
  0x10   : > { %1183 = vmatpush3.msk.msra.mxu1 %vm813_vm0, %v756_v0  ;;  %v1331_v2 = vshrl.u32 %v295_v1, 7  ;;  %1157 = vmatpush3.msk.msra.mxu0 %vm813_vm0, %v756_v0  ;;  %v1353_v6 = vld [vmem:[%s1973_s1 + $0x1] ss:$0 sm:$0xff]  ;;  %s1358_s14 = scalar_lea.vmem %s1972_s0, %s1137_s7  ;;  %v1363_v7 = vld [vmem:[%s1973_s1 + $0x4] ss:$0 sm:$0xff]  ;;  %vm764_vm5 = vcmask 31744  }
  0x11   : > { %v1368_v8 = vld [vmem:[%s1973_s1 + $0x7] ss:$0 sm:$0xff]  ;;  %s1377_s28 = scalar_lea.vmem %s1358_s14, %s1138_s27  ;;  %v1383_v10 = vld [vmem:[%s1973_s1 + $0x2] ss:$0 sm:$0xff]  ;;  %v1388_v11 = vld [vmem:[%s1973_s1 + $0x5] ss:$0 sm:$0xff] }
  0x12   : > { %v1371_v9 = vadd.s32 8, %v1331_v2  ;;  %vm409_vm1 = vcmp.lt.s32.totalorder %v1331_v2, 1  ;;  %v1392_v12 = vld [vmem:[%s1377_s28 + $0x30] sm:$0xff]  ;;  %v1395_v13 = vld [vmem:[%s1377_s28 + $0x38] sm:$0xff]  ;;  %v1398_v14 = vld [vmem:[%s1377_s28 + $0x40] sm:$0xff]  ;;  %vm426_vm2 = vcmp.ge.s32.totalorder %v1331_v2, 1 }
  0x13   : > { %s1100_s27 = sshll.u32 %s1991_s19, 5  ;;  %v1404_v15 = vld [vmem:[%s1377_s28 + $0x48] sm:$0xff]  ;;  %v1407_v16 = vld [vmem:[%s1377_s28 + $0x50] sm:$0xff]  ;;  %v1410_v17 = vld [vmem:[%s1377_s28 + $0x58] sm:$0xff]  ;;  %v311_v18 = vmul.f32 %v1337_v3, %v1392_v12  ;;  %v312_v19 = vmul.f32 %v1337_v3, %v1395_v13  ;;  %v332_v20 = vmul.f32 %v1342_v4, %v1398_v14  ;;  %v457_v21 = vmul.f32 %v1353_v6, %v1392_v12  ;;  %s1105_s16 = sshll.u32 %s1993_s8, 4 }
  0x14   : > { %vm666_vm3 = vcmp.lt.s32.totalorder %v1331_v2, 7  ;;  %s243_s19 = scalar_select %p242_p6, %s1374_s26, 15  ;;  %v333_v22 = vmul.f32 %v1342_v4, %v1404_v15  ;;  %v369_v23 = vmul.f32 %v1348_v5, %v1407_v16  ;;  %v370_v24 = vmul.f32 %v1348_v5, %v1410_v17  ;;  %v1435_v26 = vld [vmem:[%s1973_s1 + $0x8] ss:$0 sm:$0xff]  ;;  %v1457_v35 = vld [vmem:[%s1377_s28] sm:$0xff]  ;;  %v1470_v45 = vld [vmem:[%s1377_s28 + $0x10] sm:$0xff] }
  0x15   : > { %v478_v25 = vmul.f32 %v1363_v7, %v1398_v14  ;;  %vm684_vm4 = vcmp.lt.s32.totalorder %v1371_v9, 15  ;;  %v348_v27 = vadd.f32 %v332_v20, %v311_v18  ;;  %v515_v28 = vmul.f32 %v1368_v8, %v1407_v16  ;;  %v1467_v40 = vld [vmem:[%s1377_s28 + $0x8] sm:$0xff]  ;;  %v1473_v46 = vld [vmem:[%s1377_s28 + $0x18] sm:$0xff]  ;;  %s277_s15 = scalar_select %p276_p8, 1, 0 }
  0x16   : > { %v568_v29 = vmul.f32 %v1383_v10, %v1392_v12  ;;  %v569_v30 = vmul.f32 %v1383_v10, %v1395_v13  ;;  %s1099_s11 = sshll.u32 %s243_s19, 1  ;;  %v349_v31 = vadd.f32 %v333_v22, %v312_v19  ;;  %v589_v33 = vmul.f32 %v1388_v11, %v1398_v14  ;;  %s273_s17 = scalar_lea.vmem %s1358_s14, %s1105_s16  ;;  %v1901_v2 = vld [vmem:[%s1976_s4] ss:$0 sm:$0xff] }
  0x17   : > { %v494_v32 = vadd.f32 %v478_v25, %v457_v21  ;;  %v590_v34 = vmul.f32 %v1388_v11, %v1404_v15  ;;  %s1454_s13 = sadd.s32 %s1100_s27, %s1099_s11  ;;  %v385_v36 = vadd.f32 %v369_v23, %v348_v27  ;;  %v626_v37 = vmul.f32 %v1435_v26, %v1407_v16  ;;  %s278_s25 = scvt.s32.f32 %s277_s15  ;;  %v274_v1 = vld [vmem:[%s273_s17] sm:$0xff]  ;;  %v275_v18 = vld [vmem:[%s273_s17 + $0x8] sm:$0xff] }
  0x18   : > { %v627_v38 = vmul.f32 %v1435_v26, %v1410_v17  ;;  %v458_v39 = vmul.f32 %v1353_v6, %v1395_v13  ;;  %v386_v41 = vadd.f32 %v370_v24, %v349_v31  ;;  %v605_v43 = vadd.f32 %v589_v33, %v568_v29  ;;  %v1513_v25 = vld [vmem:[%s1974_s2] ss:$0 sm:$0xff]  ;;  %s1101_s19 = sshll.u32 %s1454_s13, 3 }
  0x19   : > { %v531_v42 = vadd.f32 %v515_v28, %v494_v32  ;;  %v606_v44 = vadd.f32 %v590_v34, %v569_v30  ;;  %v397_v47 = vrot.slane %v385_v36, 7  ;;  %v479_v48 = vmul.f32 %v1363_v7, %v1404_v15  ;;  %s1908_s11 = scalar_lea.vmem %s1977_s5, %s1101_s19 }
  0x1a   : > { %v516_v49 = vmul.f32 %v1368_v8, %v1410_v17  ;;  %v324_v50 = vmul.f32 %v1342_v4, %v1457_v35  ;;  %v405_v51 = vrot.slane %v386_v41, 7  ;;  %v642_v52 = vadd.f32 %v626_v37, %v605_v43 }
  0x1b   : > { %v643_v53 = vadd.f32 %v627_v38, %v606_v44  ;;  %v325_v54 = vmul.f32 %v1342_v4, %v1467_v40  ;;  %v495_v55 = vadd.f32 %v479_v48, %v458_v39  ;;  %v361_v56 = vmul.f32 %v1348_v5, %v1470_v45 }
  0x1c   : > { %v362_v57 = vmul.f32 %v1348_v5, %v1473_v46  ;;  %v470_v58 = vmul.f32 %v1363_v7, %v1457_v35  ;;  %v422_v59 = vsel %vm409_vm1, %v405_v51, %v397_v47  ;;  %v654_v60 = vrot.slane %v642_v52, 1 }
  0x1d   : > { %v662_v61 = vrot.slane %v643_v53, 1  ;;  %v414_v62 = vsel %vm409_vm1, %v397_v47, %v405_v51  ;;  %v436_v63 = vsel %vm426_vm2, %v422_v59, 0.0  ;;  %v532_v0 = vadd.f32 %v516_v49, %v495_v55 }
  0x1e   : > { %v507_v19 = vmul.f32 %v1368_v8, %v1470_v45  ;;  %v581_v20 = vmul.f32 %v1388_v11, %v1457_v35  ;;  %v547_v21 = vadd.f32 %v531_v42, %v436_v63  ;;  %v279_v24 = vstv %s278_s25 }
  0x1f   : > { %v671_v22 = vsel %vm666_vm3, %v654_v60, %v662_v61  ;;  %v679_v23 = vsel %vm666_vm3, %v662_v61, %v654_v60  ;;  %v548_v27 = vadd.f32 %v532_v0, %v414_v62  ;;  %v280_v29 = vmul.f32 %v279_v24, %v274_v1 }
  0x20   : > { %v694_v28 = vsel %vm684_vm4, %v679_v23, 0.0  ;;  %v281_v30 = vmul.f32 %v279_v24, %v275_v18  ;;  %v709_v31 = vadd.f32 %v671_v22, %v547_v21  ;;  %v582_v32 = vmul.f32 %v1388_v11, %v1467_v40 }
  0x21   : > { %v618_v33 = vmul.f32 %v1435_v26, %v1470_v45  ;;  %v619_v34 = vmul.f32 %v1435_v26, %v1473_v46  ;;  %v710_v36 = vadd.f32 %v694_v28, %v548_v27  ;;  %v303_v37 = vmul.f32 %v1337_v3, %v280_v29  ;;  %v1551_v28 = vld [vmem:[%s1377_s28 + $0x68] sm:$0xff] }
  0x22   : > { %v304_v38 = vmul.f32 %v1337_v3, %v281_v30  ;;  %v449_v39 = vmul.f32 %v1353_v6, %v280_v29  ;;  %v732_v41 = vadd.f32 %v1513_v25, %v709_v31  ;;  %v560_v42 = vmul.f32 %v1383_v10, %v280_v29 }
  0x23   : > { %v561_v43 = vmul.f32 %v1383_v10, %v281_v30  ;;  %v450_v44 = vmul.f32 %v1353_v6, %v281_v30  ;;  %v733_v47 = vadd.f32 %v1513_v25, %v710_v36  ;;  %v340_v48 = vadd.f32 %v324_v50, %v303_v37 }
  0x24   : > { %v341_v49 = vadd.f32 %v325_v54, %v304_v38  ;;  %v486_v51 = vadd.f32 %v470_v58, %v449_v39  ;;  %v748_v52 = vmax.f32 %v732_v41, 0.0  ;;  %v597_v53 = vadd.f32 %v581_v20, %v560_v42  ;;  %v1537_v54 = vld [vmem:[%s1377_s28 + $0x60] sm:$0xff] }
  0x25   : > { %v598_v55 = vadd.f32 %v582_v32, %v561_v43  ;;  %v471_v59 = vmul.f32 %v1363_v7, %v1467_v40  ;;  %v749_v60 = vmax.f32 %v733_v47, 0.0  ;;  %v377_v61 = vadd.f32 %v361_v56, %v340_v48 }
  0x26   : > { %v378_v62 = vadd.f32 %v362_v57, %v341_v49  ;;  %v523_v63 = vadd.f32 %v507_v19, %v486_v51  ;;  %1170 = vmatprep.mubr.msk.f32.mxu1 %vm764_vm5, %v748_v52  ;;  %v634_v0 = vadd.f32 %v618_v33, %v597_v53  ;;  %v508_v50 = vmul.f32 %v1368_v8, %v1473_v46 }
  0x27   : > { %v635_v1 = vadd.f32 %v619_v34, %v598_v55  ;;  %v487_v18 = vadd.f32 %v471_v59, %v450_v44  ;;  %1171 = vmatmul.mubr.msk.f32.vlgmr.msra.gmra.mxu1 %vm764_vm5, %v749_v60  ;;  %v393_v58 = vrot.slane %v377_v61, 7  ;;  %v313_v56 = vmul.f32 %v1337_v3, %v1398_v14 }
  0x28   : > { %v401_v20 = vrot.slane %v378_v62, 7  ;;  %v314_v57 = vmul.f32 %v1337_v3, %v1404_v15  ;;  %v650_v19 = vrot.slane %v634_v0, 1  ;;  %v334_v23 = vmul.f32 %v1342_v4, %v1407_v16 }
  0x29   : > { %v658_v21 = vrot.slane %v635_v1, 1  ;;  %v524_v22 = vadd.f32 %v508_v50, %v487_v18  ;;  %v335_v29 = vmul.f32 %v1342_v4, %v1410_v17  ;;  %v371_v30 = vmul.f32 %v1348_v5, %v1537_v54 }
  0x2a   : > { %v418_v24 = vsel %vm409_vm1, %v401_v20, %v393_v58  ;;  %v410_v27 = vsel %vm409_vm1, %v393_v58, %v401_v20  ;;  %v350_v38 = vadd.f32 %v334_v23, %v313_v56  ;;  %v372_v42 = vmul.f32 %v1348_v5, %v1551_v28 }
  0x2b   : > { %v428_v31 = vsel %vm426_vm2, %v418_v24, 0.0  ;;  %v667_v32 = vsel %vm666_vm3, %v650_v19, %v658_v21  ;;  %v540_v33 = vadd.f32 %v524_v22, %v410_v27  ;;  %v675_v34 = vsel %vm666_vm3, %v658_v21, %v650_v19 }
  0x2c   : > { %v539_v36 = vadd.f32 %v523_v63, %v428_v31  ;;  %v686_v37 = vsel %vm684_vm4, %v675_v34, 0.0  ;;  %v351_v39 = vadd.f32 %v335_v29, %v314_v57  ;;  %v459_v43 = vmul.f32 %v1353_v6, %v1398_v14  ;;  %v1601_v31 = vld [vmem:[%s1377_s28 + $0x20] sm:$0xff] }
  0x2d   : > { %v702_v41 = vadd.f32 %v686_v37, %v540_v33  ;;  %v480_v44 = vmul.f32 %v1363_v7, %v1407_v16  ;;  %v387_v48 = vadd.f32 %v371_v30, %v350_v38  ;;  %v517_v49 = vmul.f32 %v1368_v8, %v1537_v54 }
  0x2e   : > { %v701_v47 = vadd.f32 %v667_v32, %v539_v36  ;;  %v570_v51 = vmul.f32 %v1383_v10, %v1398_v14  ;;  %v388_v53 = vadd.f32 %v372_v42, %v351_v39  ;;  %v571_v59 = vmul.f32 %v1383_v10, %v1404_v15  ;;  %v1604_v32 = vld [vmem:[%s1377_s28 + $0x28] sm:$0xff] }
  0x2f   : > { %v725_v52 = vadd.f32 %v1513_v25, %v702_v41  ;;  %v496_v55 = vadd.f32 %v480_v44, %v459_v43  ;;  %v398_v61 = vrot.slane %v387_v48, 7  ;;  %v591_v62 = vmul.f32 %v1388_v11, %v1407_v16 }
  0x30   : > { %v724_v60 = vadd.f32 %v1513_v25, %v701_v47  ;;  %v592_v63 = vmul.f32 %v1388_v11, %v1410_v17  ;;  %v406_v1 = vrot.slane %v388_v53, 7  ;;  %v628_v50 = vmul.f32 %v1435_v26, %v1537_v54 }
  0x31   : > { %v741_v0 = vmax.f32 %v725_v52, 0.0  ;;  %v533_v18 = vadd.f32 %v517_v49, %v496_v55  ;;  %v607_v20 = vadd.f32 %v591_v62, %v570_v51  ;;  %v629_v57 = vmul.f32 %v1435_v26, %v1551_v28 }
  0x32   : > { %v740_v58 = vmax.f32 %v724_v60, 0.0  ;;  %v608_v56 = vadd.f32 %v592_v63, %v571_v59  ;;  %v423_v19 = vsel %vm409_vm1, %v406_v1, %v398_v61  ;;  %v415_v21 = vsel %vm409_vm1, %v398_v61, %v406_v1 }
  0x33   : > { %v460_v22 = vmul.f32 %v1353_v6, %v1404_v15  ;;  %v481_v23 = vmul.f32 %v1363_v7, %v1410_v17  ;;  %v438_v24 = vsel %vm426_vm2, %v423_v19, 0.0  ;;  %v644_v27 = vadd.f32 %v628_v50, %v607_v20 }
  0x34   : > { %1158 = vmatprep.mubr.msk.f32.mxu0 %vm764_vm5, %v740_v58  ;;  %v645_v29 = vadd.f32 %v629_v57, %v608_v56  ;;  %v518_v30 = vmul.f32 %v1368_v8, %v1551_v28  ;;  %v549_v33 = vadd.f32 %v533_v18, %v438_v24  ;;  %v305_v36 = vmul.f32 %v1337_v3, %v1457_v35 }
  0x35   : > { %1159 = vmatmul.mubr.msk.f32.vlgmr.msra.gmra.mxu0 %vm764_vm5, %v741_v0  ;;  %v497_v34 = vadd.f32 %v481_v23, %v460_v22  ;;  %v306_v37 = vmul.f32 %v1337_v3, %v1467_v40  ;;  %v655_v38 = vrot.slane %v644_v27, 1  ;;  %v326_v41 = vmul.f32 %v1342_v4, %v1470_v45 }
  0x36   : > { %v663_v39 = vrot.slane %v645_v29, 1  ;;  %v327_v42 = vmul.f32 %v1342_v4, %v1473_v46  ;;  %v363_v44 = vmul.f32 %v1348_v5, %v1601_v31  ;;  %v364_v47 = vmul.f32 %v1348_v5, %v1604_v32 }
  0x37   : > { %v534_v43 = vadd.f32 %v518_v30, %v497_v34  ;;  %v451_v48 = vmul.f32 %v1353_v6, %v1457_v35  ;;  %v342_v52 = vadd.f32 %v326_v41, %v305_v36  ;;  %v472_v61 = vmul.f32 %v1363_v7, %v1470_v45 }
  0x38   : > { %v672_v49 = vsel %vm666_vm3, %v655_v38, %v663_v39  ;;  %v680_v51 = vsel %vm666_vm3, %v663_v39, %v655_v38  ;;  %v343_v53 = vadd.f32 %v327_v42, %v306_v37  ;;  %v509_v0 = vmul.f32 %v1368_v8, %v1601_v31 }
  0x39   : > { %v711_v55 = vadd.f32 %v672_v49, %v549_v33  ;;  %v550_v59 = vadd.f32 %v534_v43, %v415_v21  ;;  %v696_v60 = vsel %vm684_vm4, %v680_v51, 0.0  ;;  %v379_v62 = vadd.f32 %v363_v44, %v342_v52  ;;  %v1657_v44 = vld [vmem:[%s1377_s28 + $0x70] sm:$0xff] }
  0x3a   : > { %v380_v63 = vadd.f32 %v364_v47, %v343_v53  ;;  %v562_v1 = vmul.f32 %v1383_v10, %v1457_v35  ;;  %v488_v58 = vadd.f32 %v472_v61, %v451_v48  ;;  %v563_v20 = vmul.f32 %v1383_v10, %v1467_v40  ;;  %v1660_v47 = vld [vmem:[%s1377_s28 + $0x78] sm:$0xff]  ;;  %s282_s28 = sadd.s32 8, %s1374_s26 }
  0x3b   : > { %v734_v18 = vadd.f32 %v1513_v25, %v711_v55  ;;  %v712_v50 = vadd.f32 %v696_v60, %v550_v59  ;;  %v394_v56 = vrot.slane %v379_v62, 7  ;;  %v583_v19 = vmul.f32 %v1388_v11, %v1470_v45  ;;  %p1705_p9 = scmp.lt.s32.totalorder %s282_s28, 15 }
  0x3c   : > { %v402_v57 = vrot.slane %v380_v63, 7  ;;  %v584_v21 = vmul.f32 %v1388_v11, %v1473_v46  ;;  %v525_v35 = vadd.f32 %v509_v0, %v488_v58  ;;  %v620_v24 = vmul.f32 %v1435_v26, %v1601_v31  ;;  %s1751_s26 = scalar_select %p289_p10, 1, 0 }
  0x3d   : > { %v750_v22 = vmax.f32 %v734_v18, 0.0  ;;  %v735_v23 = vadd.f32 %v1513_v25, %v712_v50  ;;  %v599_v29 = vadd.f32 %v583_v19, %v562_v1  ;;  %v621_v33 = vmul.f32 %v1435_v26, %v1604_v32  ;;  %s1995_s28 = smov (!%p1705_p9, %s282_s28), 15 }
  0x3e   : > { %v419_v27 = vsel %vm409_vm1, %v402_v57, %v394_v56  ;;  %v600_v30 = vadd.f32 %v584_v21, %v563_v20  ;;  %v411_v37 = vsel %vm409_vm1, %v394_v56, %v402_v57  ;;  %v452_v38 = vmul.f32 %v1353_v6, %v1467_v40  ;;  %s1106_s7 = sshll.u32 %s1995_s28, 4  ;;  %s291_s27 = scvt.s32.f32 %s1751_s26 }
  0x3f   : > { %1173 = vmatprep.mubr.msk.f32.mxu1 %vm764_vm5, %v750_v22  ;;  %v751_v34 = vmax.f32 %v735_v23, 0.0  ;;  %v430_v36 = vsel %vm426_vm2, %v419_v27, 0.0  ;;  %v636_v41 = vadd.f32 %v620_v24, %v599_v29  ;;  %v473_v43 = vmul.f32 %v1363_v7, %v1473_v46  ;;  %s286_s18 = scalar_lea.vmem %s1358_s14, %s1106_s7 }
  0x40   : > { %v541_v39 = vadd.f32 %v525_v35, %v430_v36  ;;  %v637_v42 = vadd.f32 %v621_v33, %v600_v30  ;;  %v510_v48 = vmul.f32 %v1368_v8, %v1604_v32  ;;  %v315_v49 = vmul.f32 %v1337_v3, %v1407_v16 }
  0x41   : > { %1174 = vmatmul.mubr.msk.f32.gmra.mxu1 %vm764_vm5, %v751_v34  ;;  %v316_v40 = vmul.f32 %v1337_v3, %v1410_v17  ;;  %v336_v51 = vmul.f32 %v1342_v4, %v1537_v54  ;;  %v651_v52 = vrot.slane %v636_v41, 1  ;;  %v489_v55 = vadd.f32 %v473_v43, %v452_v38 }
  0x42   : > { %v659_v53 = vrot.slane %v637_v42, 1  ;;  %v337_v59 = vmul.f32 %v1342_v4, %v1551_v28  ;;  %v373_v61 = vmul.f32 %v1348_v5, %v1657_v44  ;;  %v374_v62 = vmul.f32 %v1348_v5, %v1660_v47 }
  0x43   : > { %v352_v60 = vadd.f32 %v336_v51, %v315_v49  ;;  %v461_v63 = vmul.f32 %v1353_v6, %v1407_v16  ;;  %v526_v1 = vadd.f32 %v510_v48, %v489_v55  ;;  %v482_v57 = vmul.f32 %v1363_v7, %v1537_v54 }
  0x44   : > { %v668_v0 = vsel %vm666_vm3, %v651_v52, %v659_v53  ;;  %v676_v18 = vsel %vm666_vm3, %v659_v53, %v651_v52  ;;  %v353_v50 = vadd.f32 %v337_v59, %v316_v40  ;;  %v519_v22 = vmul.f32 %v1368_v8, %v1657_v44 }
  0x45   : > { %v703_v58 = vadd.f32 %v668_v0, %v541_v39  ;;  %v688_v20 = vsel %vm684_vm4, %v676_v18, 0.0  ;;  %v389_v56 = vadd.f32 %v373_v61, %v352_v60  ;;  %v542_v19 = vadd.f32 %v526_v1, %v411_v37 }
  0x46   : > { %v390_v21 = vadd.f32 %v374_v62, %v353_v50  ;;  %v572_v23 = vmul.f32 %v1383_v10, %v1407_v16  ;;  %v498_v27 = vadd.f32 %v482_v57, %v461_v63  ;;  %v573_v29 = vmul.f32 %v1383_v10, %v1410_v17 }
  0x47   : > { %v726_v35 = vadd.f32 %v1513_v25, %v703_v58  ;;  %v399_v24 = vrot.slane %v389_v56, 7  ;;  %v704_v30 = vadd.f32 %v688_v20, %v542_v19  ;;  %v593_v34 = vmul.f32 %v1388_v11, %v1537_v54 }
  0x48   : > { %v407_v33 = vrot.slane %v390_v21, 7  ;;  %v594_v36 = vmul.f32 %v1388_v11, %v1551_v28  ;;  %v535_v38 = vadd.f32 %v519_v22, %v498_v27  ;;  %v630_v16 = vmul.f32 %v1435_v26, %v1657_v44 }
  0x49   : > { %v742_v37 = vmax.f32 %v726_v35, 0.0  ;;  %v631_v39 = vmul.f32 %v1435_v26, %v1660_v47  ;;  %v727_v41 = vadd.f32 %v1513_v25, %v704_v30  ;;  %v609_v43 = vadd.f32 %v593_v34, %v572_v23 }
  0x4a   : > { %v424_v42 = vsel %vm409_vm1, %v407_v33, %v399_v24  ;;  %v610_v48 = vadd.f32 %v594_v36, %v573_v29  ;;  %v416_v40 = vsel %vm409_vm1, %v399_v24, %v407_v33  ;;  %v462_v51 = vmul.f32 %v1353_v6, %v1410_v17 }
  0x4b   : > { %1161 = vmatprep.mubr.msk.f32.mxu0 %vm764_vm5, %v742_v37  ;;  %v440_v49 = vsel %vm426_vm2, %v424_v42, 0.0  ;;  %v483_v52 = vmul.f32 %v1363_v7, %v1551_v28  ;;  %v743_v53 = vmax.f32 %v727_v41, 0.0  ;;  %v646_v59 = vadd.f32 %v630_v16, %v609_v43 }
  0x4c   : > { %v551_v55 = vadd.f32 %v535_v38, %v440_v49  ;;  %v647_v60 = vadd.f32 %v631_v39, %v610_v48  ;;  %v520_v62 = vmul.f32 %v1368_v8, %v1660_v47  ;;  %v307_v63 = vmul.f32 %v1337_v3, %v1470_v45 }
  0x4d   : > { %v499_v61 = vadd.f32 %v483_v52, %v462_v51  ;;  %v308_v0 = vmul.f32 %v1337_v3, %v1473_v46  ;;  %1162 = vmatmul.mubr.msk.f32.gmra.mxu0 %vm764_vm5, %v743_v53  ;;  %v656_v17 = vrot.slane %v646_v59, 1  ;;  %v328_v18 = vmul.f32 %v1342_v4, %v1601_v31 }
  0x4e   : > { %v664_v1 = vrot.slane %v647_v60, 1  ;;  %v329_v50 = vmul.f32 %v1342_v4, %v1604_v32  ;;  %v365_v20 = vmul.f32 %v1348_v5, %v1392_v12  ;;  %v366_v56 = vmul.f32 %v1348_v5, %v1395_v13 }
  0x4f   : > { %v536_v58 = vadd.f32 %v520_v62, %v499_v61  ;;  %v453_v57 = vmul.f32 %v1353_v6, %v1470_v45  ;;  %v344_v22 = vadd.f32 %v328_v18, %v307_v63  ;;  %v474_v29 = vmul.f32 %v1363_v7, %v1601_v31 }
  0x50   : > { %v673_v19 = vsel %vm666_vm3, %v656_v17, %v664_v1  ;;  %v681_v21 = vsel %vm666_vm3, %v664_v1, %v656_v17  ;;  %v345_v23 = vadd.f32 %v329_v50, %v308_v0  ;;  %v511_v34 = vmul.f32 %v1368_v8, %v1392_v12  ;;  %v287_v0 = vld [vmem:[%s286_s18] sm:$0xff] }
  0x51   : > { %v713_v35 = vadd.f32 %v673_v19, %v551_v55  ;;  %v552_v24 = vadd.f32 %v536_v58, %v416_v40  ;;  %v698_v27 = vsel %vm684_vm4, %v681_v21, 0.0  ;;  %v381_v30 = vadd.f32 %v365_v20, %v344_v22  ;;  %v288_v58 = vld [vmem:[%s286_s18 + $0x8] sm:$0xff] }
  0x52   : > { %v382_v33 = vadd.f32 %v366_v56, %v345_v23  ;;  %v564_v36 = vmul.f32 %v1383_v10, %v1470_v45  ;;  %v490_v16 = vadd.f32 %v474_v29, %v453_v57  ;;  %v565_v39 = vmul.f32 %v1383_v10, %v1473_v46 }
  0x53   : > { %v736_v37 = vadd.f32 %v1513_v25, %v713_v35  ;;  %v714_v38 = vadd.f32 %v698_v27, %v552_v24  ;;  %v395_v41 = vrot.slane %v381_v30, 7  ;;  %v585_v43 = vmul.f32 %v1388_v11, %v1601_v31 }
  0x54   : > { %v403_v42 = vrot.slane %v382_v33, 7  ;;  %v586_v48 = vmul.f32 %v1388_v11, %v1604_v32  ;;  %v527_v45 = vadd.f32 %v511_v34, %v490_v16  ;;  %v622_v51 = vmul.f32 %v1435_v26, %v1392_v12 }
  0x55   : > { %v752_v49 = vmax.f32 %v736_v37, 0.0  ;;  %v737_v40 = vadd.f32 %v1513_v25, %v714_v38  ;;  %v601_v53 = vadd.f32 %v585_v43, %v564_v36  ;;  %v623_v59 = vmul.f32 %v1435_v26, %v1395_v13 }
  0x56   : > { %v420_v52 = vsel %vm409_vm1, %v403_v42, %v395_v41  ;;  %v602_v55 = vadd.f32 %v586_v48, %v565_v39  ;;  %v412_v62 = vsel %vm409_vm1, %v395_v41, %v403_v42  ;;  %v454_v63 = vmul.f32 %v1353_v6, %v1473_v46 }
  0x57   : > { %1176 = vmatprep.mubr.msk.f32.mxu1 %vm764_vm5, %v752_v49  ;;  %v753_v60 = vmax.f32 %v737_v40, 0.0  ;;  %v432_v61 = vsel %vm426_vm2, %v420_v52, 0.0  ;;  %v638_v1 = vadd.f32 %v622_v51, %v601_v53  ;;  %v475_v50 = vmul.f32 %v1363_v7, %v1604_v32 }
  0x58   : > { %v543_v17 = vadd.f32 %v527_v45, %v432_v61  ;;  %v639_v18 = vadd.f32 %v623_v59, %v602_v55  ;;  %v512_v20 = vmul.f32 %v1368_v8, %v1395_v13  ;;  %v292_v56 = vstv %s291_s27 }
  0x59   : > { %1177 = vmatmul.mubr.msk.f32.gmra.mxu1 %vm764_vm5, %v753_v60  ;;  %v317_v57 = vmul.f32 %v1337_v3, %v1537_v54  ;;  %v318_v46 = vmul.f32 %v1337_v3, %v1551_v28  ;;  %v652_v19 = vrot.slane %v638_v1, 1  ;;  %v491_v22 = vadd.f32 %v475_v50, %v454_v63 }
  0x5a   : > { %v660_v21 = vrot.slane %v639_v18, 1  ;;  %v293_v23 = vmul.f32 %v292_v56, %v287_v0  ;;  %v294_v35 = vmul.f32 %v292_v56, %v288_v58  ;;  %v338_v24 = vmul.f32 %v1342_v4, %v1657_v44 }
  0x5b   : > { %v339_v27 = vmul.f32 %v1342_v4, %v1660_v47  ;;  %v463_v29 = vmul.f32 %v1353_v6, %v1537_v54  ;;  %v528_v33 = vadd.f32 %v512_v20, %v491_v22  ;;  %v484_v43 = vmul.f32 %v1363_v7, %v1657_v44 }
  0x5c   : > { %v669_v30 = vsel %vm666_vm3, %v652_v19, %v660_v21  ;;  %v677_v34 = vsel %vm666_vm3, %v660_v21, %v652_v19  ;;  %v375_v36 = vmul.f32 %v1348_v5, %v293_v23  ;;  %v354_v16 = vadd.f32 %v338_v24, %v317_v57 }
  0x5d   : > { %v705_v37 = vadd.f32 %v669_v30, %v543_v17  ;;  %v690_v38 = vsel %vm684_vm4, %v677_v34, 0.0  ;;  %v355_v39 = vadd.f32 %v339_v27, %v318_v46  ;;  %v544_v41 = vadd.f32 %v528_v33, %v412_v62 }
  0x5e   : > { %v376_v42 = vmul.f32 %v1348_v5, %v294_v35  ;;  %v521_v48 = vmul.f32 %v1368_v8, %v293_v23  ;;  %v391_v40 = vadd.f32 %v375_v36, %v354_v16  ;;  %v574_v45 = vmul.f32 %v1383_v10, %v1537_v54 }
  0x5f   : > { %v728_v49 = vadd.f32 %v1513_v25, %v705_v37  ;;  %v575_v51 = vmul.f32 %v1383_v10, %v1551_v28  ;;  %v706_v52 = vadd.f32 %v690_v38, %v544_v41  ;;  %v500_v55 = vadd.f32 %v484_v43, %v463_v29 }
  0x60   : > { %v392_v53 = vadd.f32 %v376_v42, %v355_v39  ;;  %v595_v59 = vmul.f32 %v1388_v11, %v1657_v44  ;;  %v400_v61 = vrot.slane %v391_v40, 7  ;;  %v596_v62 = vmul.f32 %v1388_v11, %v1660_v47 }
  0x61   : > { %v744_v60 = vmax.f32 %v728_v49, 0.0  ;;  %v632_v63 = vmul.f32 %v1435_v26, %v293_v23  ;;  %v729_v0 = vadd.f32 %v1513_v25, %v706_v52  ;;  %v537_v54 = vadd.f32 %v521_v48, %v500_v55 }
  0x62   : > { %v408_v17 = vrot.slane %v392_v53, 7  ;;  %v611_v1 = vadd.f32 %v595_v59, %v574_v45  ;;  %v612_v18 = vadd.f32 %v596_v62, %v575_v51  ;;  %v633_v50 = vmul.f32 %v1435_v26, %v294_v35 }
  0x63   : > { %1164 = vmatprep.mubr.msk.f32.mxu0 %vm764_vm5, %v744_v60  ;;  %v464_v44 = vmul.f32 %v1353_v6, %v1551_v28  ;;  %v485_v58 = vmul.f32 %v1363_v7, %v1660_v47  ;;  %v745_v20 = vmax.f32 %v729_v0, 0.0  ;;  %v522_v23 = vmul.f32 %v1368_v8, %v294_v35 }
  0x64   : > { %v425_v56 = vsel %vm409_vm1, %v408_v17, %v400_v61  ;;  %v648_v57 = vadd.f32 %v632_v63, %v611_v1  ;;  %v417_v46 = vsel %vm409_vm1, %v400_v61, %v408_v17  ;;  %v649_v21 = vadd.f32 %v633_v50, %v612_v18 }
  0x65   : > { %v442_v19 = vsel %vm426_vm2, %v425_v56, 0.0  ;;  %v501_v22 = vadd.f32 %v485_v58, %v464_v44  ;;  %1165 = vmatmul.mubr.msk.f32.gmra.mxu0 %vm764_vm5, %v745_v20  ;;  %v309_v47 = vmul.f32 %v1337_v3, %v1601_v31  ;;  %v310_v27 = vmul.f32 %v1337_v3, %v1604_v32 }
  0x66   : > { %v553_v28 = vadd.f32 %v537_v54, %v442_v19  ;;  %v657_v24 = vrot.slane %v648_v57, 1  ;;  %v665_v29 = vrot.slane %v649_v21, 1  ;;  %v330_v33 = vmul.f32 %v1342_v4, %v1392_v12 }
  0x67   : > { %v538_v30 = vadd.f32 %v522_v23, %v501_v22  ;;  %v331_v34 = vmul.f32 %v1342_v4, %v1395_v13  ;;  %v367_v35 = vmul.f32 %v1348_v5, %v1398_v14  ;;  %v368_v36 = vmul.f32 %v1348_v5, %v1404_v15 }
  0x68   : > { %v455_v37 = vmul.f32 %v1353_v6, %v1601_v31  ;;  %v476_v3 = vmul.f32 %v1363_v7, %v1392_v12  ;;  %v674_v38 = vsel %vm666_vm3, %v657_v24, %v665_v29  ;;  %v682_v39 = vsel %vm666_vm3, %v665_v29, %v657_v24 }
  0x69   : > { %v554_v16 = vadd.f32 %v538_v30, %v417_v46  ;;  %v346_v4 = vadd.f32 %v330_v33, %v309_v47  ;;  %v715_v41 = vadd.f32 %v674_v38, %v553_v28  ;;  %v700_v42 = vsel %vm684_vm4, %v682_v39, 0.0 }
  0x6a   : > { %v347_v43 = vadd.f32 %v331_v34, %v310_v27  ;;  %v492_v5 = vadd.f32 %v476_v3, %v455_v37  ;;  %v513_v40 = vmul.f32 %v1368_v8, %v1398_v14  ;;  %v566_v45 = vmul.f32 %v1383_v10, %v1601_v31 }
  0x6b   : > { %v716_v48 = vadd.f32 %v700_v42, %v554_v16  ;;  %v383_v49 = vadd.f32 %v367_v35, %v346_v4  ;;  %v738_v51 = vadd.f32 %v1513_v25, %v715_v41  ;;  %v567_v53 = vmul.f32 %v1383_v10, %v1604_v32 }
  0x6c   : > { %v384_v52 = vadd.f32 %v368_v36, %v347_v43  ;;  %v587_v55 = vmul.f32 %v1388_v11, %v1392_v12  ;;  %v529_v61 = vadd.f32 %v513_v40, %v492_v5  ;;  %v588_v62 = vmul.f32 %v1388_v11, %v1395_v13 }
  0x6d   : > { %v739_v59 = vadd.f32 %v1513_v25, %v716_v48  ;;  %v396_v60 = vrot.slane %v383_v49, 7  ;;  %v754_v63 = vmax.f32 %v738_v51, 0.0  ;;  %v624_v31 = vmul.f32 %v1435_v26, %v1398_v14 }
  0x6e   : > { %v404_v0 = vrot.slane %v384_v52, 7  ;;  %v603_v17 = vadd.f32 %v587_v55, %v566_v45  ;;  %v604_v1 = vadd.f32 %v588_v62, %v567_v53  ;;  %v625_v10 = vmul.f32 %v1435_v26, %v1404_v15 }
  0x6f   : > { %v755_v54 = vmax.f32 %v739_v59, 0.0  ;;  %v456_v12 = vmul.f32 %v1353_v6, %v1604_v32  ;;  %1179 = vmatprep.mubr.msk.f32.mxu1 %vm764_vm5, %v754_v63  ;;  %v477_v50 = vmul.f32 %v1363_v7, %v1395_v13  ;;  %v514_v26 = vmul.f32 %v1368_v8, %v1404_v15 }
  0x70   : > { %v421_v18 = vsel %vm409_vm1, %v404_v0, %v396_v60  ;;  %v640_v11 = vadd.f32 %v624_v31, %v603_v17  ;;  %v641_v44 = vadd.f32 %v625_v10, %v604_v1  ;;  %v413_v56 = vsel %vm409_vm1, %v396_v60, %v404_v0 }
  0x71   : > { %1180 = vmatmul.mubr.msk.f32.gmra.mxu1 %vm764_vm5, %v755_v54  ;;  %v434_v14 = vsel %vm426_vm2, %v421_v18, 0.0  ;;  %v493_v32 = vadd.f32 %v477_v50, %v456_v12  ;;  %vm978_vm6 = vcmask 64512  }
  0x72   : > { %v545_v58 = vadd.f32 %v529_v61, %v434_v14  ;;  %v653_v6 = vrot.slane %v640_v11, 1  ;;  %v661_v20 = vrot.slane %v641_v44, 1 }
  0x73   : > { %v530_v57 = vadd.f32 %v514_v26, %v493_v32 }
  0x74   : > { %v670_v7 = vsel %vm666_vm3, %v653_v6, %v661_v20  ;;  %v678_v13 = vsel %vm666_vm3, %v661_v20, %v653_v6 }
  0x75   : > { %v707_v46 = vadd.f32 %v670_v7, %v545_v58  ;;  %v546_v19 = vadd.f32 %v530_v57, %v413_v56  ;;  %v692_v8 = vsel %vm684_vm4, %v678_v13, 0.0 }
  0x77   : > { %v730_v15 = vadd.f32 %v1513_v25, %v707_v46  ;;  %v708_v21 = vadd.f32 %v692_v8, %v546_v19 }
  0x79   : > { %v746_v22 = vmax.f32 %v730_v15, 0.0  ;;  %v731_v23 = vadd.f32 %v1513_v25, %v708_v21 }
  0x7b   : > { %1167 = vmatprep.mubr.msk.f32.mxu0 %vm764_vm5, %v746_v22  ;;  %v747_v28 = vmax.f32 %v731_v23, 0.0 }
  0x7d   : > { %1168 = vmatmul.mubr.msk.f32.gmra.mxu0 %vm764_vm5, %v747_v28 }
  0xe7   : > { %v1172_v24 = vpop.f32.mrf.mxu1 }
  0xe8   : > { %v929_v9 = vadd.f32 %v1172_v24, %v1901_v2 }
  0xe9   : > { %v923_v25 = vpop.f32.mrf.mxu1 }
  0xea   : > { %v971_v47 = vmax.f32 %v929_v9, 0.0  ;;  %v924_v27 = vadd.f32 %v1901_v2, %v923_v25 }
  0xec   : > { %988 = vst.msk [vmem:[%s1908_s11 + $0x48] sm:$0xff] %vm978_vm6, %v971_v47  ;;  %v970_v29 = vmax.f32 %v924_v27, 0.0 }
  0xee   : > { %987 = vst.msk [vmem:[%s1908_s11 + $0x40] sm:$0xff] %vm978_vm6, %v970_v29 }
  0xf5   : > { %v1160_v30 = vpop.f32.mrf.mxu0 }
  0xf6   : > { %v889_v33 = vadd.f32 %v1160_v30, %v1901_v2 }
  0xf7   : > { %v883_v34 = vpop.f32.mrf.mxu0 }
  0xf8   : > { %v963_v35 = vmax.f32 %v889_v33, 0.0  ;;  %v884_v36 = vadd.f32 %v1901_v2, %v883_v34 }
  0xfa   : > { %980 = vst.msk [vmem:[%s1908_s11 + $0x8] sm:$0xff] %vm978_vm6, %v963_v35  ;;  %v962_v37 = vmax.f32 %v884_v36, 0.0 }
  0xfc   : > { %979 = vst.msk [vmem:[%s1908_s11] sm:$0xff] %vm978_vm6, %v962_v37 }
 0x101   : > { %v1175_v3 = vpop.f32.mrf.mxu1 }
 0x102   : > { %v939_v38 = vadd.f32 %v1175_v3, %v1901_v2 }
 0x103   : > { %v933_v16 = vpop.f32.mrf.mxu1 }
 0x104   : > { %v973_v39 = vmax.f32 %v939_v38, 0.0  ;;  %v934_v4 = vadd.f32 %v1901_v2, %v933_v16 }
 0x106   : > { %990 = vst.msk [vmem:[%s1908_s11 + $0x58] sm:$0xff] %vm978_vm6, %v973_v39  ;;  %v972_v41 = vmax.f32 %v934_v4, 0.0 }
 0x108   : > { %989 = vst.msk [vmem:[%s1908_s11 + $0x50] sm:$0xff] %vm978_vm6, %v972_v41 }
 0x10d   : > { %v1163_v42 = vpop.f32.mrf.mxu0 }
 0x10e   : > { %v899_v43 = vadd.f32 %v1163_v42, %v1901_v2 }
 0x10f   : > { %v893_v5 = vpop.f32.mrf.mxu0 }
 0x110   : > { %v965_v48 = vmax.f32 %v899_v43, 0.0  ;;  %v894_v49 = vadd.f32 %v1901_v2, %v893_v5 }
 0x112   : > { %982 = vst.msk [vmem:[%s1908_s11 + $0x18] sm:$0xff] %vm978_vm6, %v965_v48  ;;  %v964_v40 = vmax.f32 %v894_v49, 0.0 }
 0x114   : > { %981 = vst.msk [vmem:[%s1908_s11 + $0x10] sm:$0xff] %vm978_vm6, %v964_v40 }
 0x119   : > { %v1178_v45 = vpop.f32.mrf.mxu1 }
 0x11a   : > { %v949_v51 = vadd.f32 %v1178_v45, %v1901_v2 }
 0x11b   : > { %v943_v52 = vpop.f32.mrf.mxu1 }
 0x11c   : > { %v975_v53 = vmax.f32 %v949_v51, 0.0  ;;  %v944_v55 = vadd.f32 %v1901_v2, %v943_v52 }
 0x11e   : > { %992 = vst.msk [vmem:[%s1908_s11 + $0x68] sm:$0xff] %vm978_vm6, %v975_v53  ;;  %v974_v59 = vmax.f32 %v944_v55, 0.0 }
 0x120   : > { %991 = vst.msk [vmem:[%s1908_s11 + $0x60] sm:$0xff] %vm978_vm6, %v974_v59 }
 0x125   : > { %v1166_v60 = vpop.f32.mrf.mxu0 }
 0x126   : > { %v909_v61 = vadd.f32 %v1166_v60, %v1901_v2 }
 0x127   : > { %v903_v62 = vpop.f32.mrf.mxu0 }
 0x128   : > { %v967_v63 = vmax.f32 %v909_v61, 0.0  ;;  %v904_v0 = vadd.f32 %v1901_v2, %v903_v62 }
 0x12a   : > { %984 = vst.msk [vmem:[%s1908_s11 + $0x28] sm:$0xff] %vm978_vm6, %v967_v63  ;;  %v966_v17 = vmax.f32 %v904_v0, 0.0 }
 0x12c   : > { %983 = vst.msk [vmem:[%s1908_s11 + $0x20] sm:$0xff] %vm978_vm6, %v966_v17 }
 0x131   : > { %v1181_v31 = vpop.f32.mrf.mxu1 }
 0x132   : > { %v959_v54 = vadd.f32 %v1181_v31, %v1901_v2 }
 0x133   : > { %v953_v1 = vpop.f32.mrf.mxu1 }
 0x134   : > { %v977_v10 = vmax.f32 %v959_v54, 0.0  ;;  %v954_v12 = vadd.f32 %v1901_v2, %v953_v1 }
 0x136   : > { %994 = vst.msk [vmem:[%s1908_s11 + $0x78] sm:$0xff] %vm978_vm6, %v977_v10  ;;  %v976_v18 = vmax.f32 %v954_v12, 0.0 }
 0x138   : > { %993 = vst.msk [vmem:[%s1908_s11 + $0x70] sm:$0xff] %vm978_vm6, %v976_v18 }
 0x13d   : > { %v1169_v11 = vpop.f32.mrf.mxu0 }
 0x13e   : > { %v919_v50 = vadd.f32 %v1169_v11, %v1901_v2 }
 0x13f   : > { %v913_v14 = vpop.f32.mrf.mxu0 }
 0x140   : > { %v969_v44 = vmax.f32 %v919_v50, 0.0  ;;  %v914_v26 = vadd.f32 %v1901_v2, %v913_v14 }
 0x142   : > { %986 = vst.msk [vmem:[%s1908_s11 + $0x38] sm:$0xff] %vm978_vm6, %v969_v44  ;;  %v968_v58 = vmax.f32 %v914_v26, 0.0 }
 0x144   : > { %985 = vst.msk [vmem:[%s1908_s11 + $0x30] sm:$0xff] %vm978_vm6, %v968_v58 }
 0x145 PF: > { %s15_s22 = sadd.s32 1, %s1262_s22   ;;  %s1980_s18 = smov %s1254_s20 }
 0x146   : > { %p12_p11 = scmp.ge.s32.totalorder %s15_s22, 6   ;;  %s1981_s19 = smov %s1258_s21 }
 0x147   : > { %s1982_s20 = smov %s1985_s23  ;;  %s1983_s21 = smov %s1989_s24 }
 0x148   :  { %14 = sbr.rel (!%p12_p11) target bundleno = 3 (0x3), region = 73 }

</bundles_post_ra>
